<compile_context>
chip_gen: v7x
topology: tpu7x:2x2x1
jax: 0.10.0
libtpu: 0.0.40
codegen_flags: <defaults>
</compile_context>

<pallas_src>
import functools

import jax
import jax.numpy as jnp
from jax import lax
from jax.experimental import pallas as pl
from jax.experimental.pallas import tpu as pltpu


def _orth_reg_kernel(rofs_ref, centers_ref, center_ref, orth_ref, *,
                     inv_n, inv_orth_denom):
    # rofs_ref, centers_ref : (N, Mp, Cp) f32 VMEM (zero padded)
    # center_ref, orth_ref  : (1, 1) f32 SMEM scalar outputs
    r = rofs_ref[...]
    c = centers_ref[...]

    # ---- center loss: sum((r - c)^2) / N (zero padding contributes 0) ----
    diff = r - c
    center_ref[0, 0] = jnp.sum(diff * diff) * inv_n

    # ---- orth loss ----
    # L2-normalize along the feature (lane) axis; eps matches F.normalize.
    r_norm = jnp.sqrt(jnp.sum(r * r, axis=-1, keepdims=True))
    c_norm = jnp.sqrt(jnp.sum(c * c, axis=-1, keepdims=True))
    rn = r / jnp.maximum(r_norm, 1e-12)
    cn = c / jnp.maximum(c_norm, 1e-12)

    # Batched similarity matrix (N, Mp, Mp) on the MXU.
    sim = jnp.einsum("nmc,nkc->nmk", rn, cn,
                     preferred_element_type=jnp.float32)

    # Off-diagonal |sim| sum (padded rows are all-zero -> contribute 0).
    row = lax.broadcasted_iota(jnp.int32, sim.shape, 1)
    col = lax.broadcasted_iota(jnp.int32, sim.shape, 2)
    off_diag = row != col
    orth_sum = jnp.sum(jnp.where(off_diag, jnp.abs(sim), 0.0))
    orth_ref[0, 0] = orth_sum * inv_orth_denom


def orth_reg_regularization(rofs, centers, *, base_channels, sigma=2.0):
    """rofs, centers: (N, M*base_channels) float arrays.

    Returns (center_loss, orth_loss) matching OrthRegRegularization.forward.
    `sigma` is stored but unused in the PyTorch forward; kept for API parity.
    """
    del sigma
    N, MC = rofs.shape
    assert centers.shape == (N, MC)
    assert MC % base_channels == 0
    M = MC // base_channels
    C = base_channels

    # Lane/sublane-dense zero padding (inert for every loss term).
    Mp = ((M + 7) // 8) * 8
    Cp = ((C + 127) // 128) * 128
    r3 = rofs.reshape(N, M, C).astype(jnp.float32)
    c3 = centers.reshape(N, M, C).astype(jnp.float32)
    if (Mp, Cp) != (M, C):
        pad = ((0, 0), (0, Mp - M), (0, Cp - C))
        r3 = jnp.pad(r3, pad)
        c3 = jnp.pad(c3, pad)

    inv_n = 1.0 / N
    inv_orth_denom = (1.0 / (float(M * M - M) + 1e-6)) * inv_n

    kernel = functools.partial(_orth_reg_kernel, inv_n=inv_n,
                               inv_orth_denom=inv_orth_denom)

    # Single-shot kernel: even at production sizes (e.g. N=32, M=8, C=2048
    # -> ~2 MiB per input) the whole problem fits VMEM comfortably.
    # TODO(synk): for very large N, add a "parallel" N-tile grid axis (with a
    # per-step accumulator) so the grid shards across v7x's two TensorCores.
    center_loss, orth_loss = pl.pallas_call(
        kernel,
        out_shape=(
            jax.ShapeDtypeStruct((1, 1), jnp.float32),
            jax.ShapeDtypeStruct((1, 1), jnp.float32),
        ),
        in_specs=[
            pl.BlockSpec(memory_space=pltpu.MemorySpace.VMEM),
            pl.BlockSpec(memory_space=pltpu.MemorySpace.VMEM),
        ],
        out_specs=(
            pl.BlockSpec(memory_space=pltpu.MemorySpace.SMEM),
            pl.BlockSpec(memory_space=pltpu.MemorySpace.SMEM),
        ),
    )(r3, c3)
    return center_loss[0, 0], orth_loss[0, 0]


def orth_reg_ref(rofs, centers, base_channels):
    # Pure-JAX reference matching the PyTorch module.
    N, MC = rofs.shape
    M = MC // base_channels
    center_loss = jnp.sum((rofs - centers) ** 2) / N
    r = rofs.reshape(N, M, base_channels)
    c = centers.reshape(N, M, base_channels)
    rn = r / jnp.maximum(jnp.linalg.norm(r, axis=-1, keepdims=True), 1e-12)
    cn = c / jnp.maximum(jnp.linalg.norm(c, axis=-1, keepdims=True), 1e-12)
    sim = jnp.einsum("nmc,nkc->nmk", rn, cn,
                     precision=jax.lax.Precision.HIGHEST)
    mask = 1.0 - jnp.eye(M, dtype=jnp.float32)
    orth = jnp.sum(jnp.abs(sim * mask[None]))
    orth_loss = orth / (mask.sum() + 1e-6) / N
    return center_loss, orth_loss


if __name__ == "__main__":
    key = jax.random.PRNGKey(0)
    # Small shapes consistent with the module: batch N=2, M=4 regions,
    # base_channels=128 (module default is 2048; 128 keeps the test small).
    N, M, C = 2, 4, 128
    k1, k2 = jax.random.split(key)
    rofs = jax.random.normal(k1, (N, M * C), dtype=jnp.float32)
    centers = jax.random.normal(k2, (N, M * C), dtype=jnp.float32)

    center_loss, orth_loss = orth_reg_regularization(
        rofs, centers, base_channels=C)
    jax.block_until_ready((center_loss, orth_loss))

    ref_center, ref_orth = orth_reg_ref(rofs, centers, C)
    assert jnp.allclose(center_loss, ref_center, rtol=1e-4, atol=1e-4), (
        center_loss, ref_center)
    assert jnp.allclose(orth_loss, ref_orth, rtol=1e-4, atol=1e-4), (
        orth_loss, ref_orth)

    print("KERNEL_OK")
</pallas_src>

<mosaic_0001>
module attributes {stable_mosaic.version = 11 : i64} {
  func.func @_orth_reg_kernel(%arg0: memref<2x8x128xf32, #tpu.memory_space<vmem>>, %arg1: memref<2x8x128xf32, #tpu.memory_space<vmem>>, %arg2: memref<1x1xf32, #tpu.memory_space<smem>>, %arg3: memref<1x1xf32, #tpu.memory_space<smem>>) attributes {dimension_semantics = [], scalar_prefetch = 0 : i64, scratch_operands = 0 : i64, tpu.core_type = #tpu.core_type<tc>} {
    %c0 = arith.constant 0 : index
    %c0_0 = arith.constant 0 : index
    %c0_1 = arith.constant 0 : index
    %0 = vector.load %arg0[%c0, %c0_0, %c0_1] : memref<2x8x128xf32, #tpu.memory_space<vmem>>, vector<2x8x128xf32>
    %c0_2 = arith.constant 0 : index
    %c0_3 = arith.constant 0 : index
    %c0_4 = arith.constant 0 : index
    %1 = vector.load %arg1[%c0_2, %c0_3, %c0_4] : memref<2x8x128xf32, #tpu.memory_space<vmem>>, vector<2x8x128xf32>
    %2 = arith.subf %0, %1 : vector<2x8x128xf32>
    %3 = arith.mulf %2, %2 : vector<2x8x128xf32>
    %4 = vector.shape_cast %3 : vector<2x8x128xf32> to vector<1x2x8x128xf32>
    %cst = arith.constant dense<0.000000e+00> : vector<1xf32>
    %5 = vector.multi_reduction <add>, %4, %cst [1, 2, 3] : vector<1x2x8x128xf32> to vector<1xf32>
    %6 = vector.shape_cast %5 : vector<1xf32> to vector<1x1x1x1xf32>
    %7 = vector.extract %6[0, 0, 0, 0] : f32 from vector<1x1x1x1xf32>
    %cst_5 = arith.constant 5.000000e-01 : f32
    %8 = arith.mulf %7, %cst_5 : f32
    %c0_6 = arith.constant 0 : index
    %c0_7 = arith.constant 0 : index
    %9 = memref.load %arg2[%c0_6, %c0_7] : memref<1x1xf32, #tpu.memory_space<smem>>
    memref.store %8, %arg2[%c0_6, %c0_7] : memref<1x1xf32, #tpu.memory_space<smem>>
    %10 = arith.mulf %0, %0 : vector<2x8x128xf32>
    %cst_8 = arith.constant dense<0.000000e+00> : vector<2x8xf32>
    %11 = vector.multi_reduction <add>, %10, %cst_8 [2] : vector<2x8x128xf32> to vector<2x8xf32>
    %12 = vector.shape_cast %11 : vector<2x8xf32> to vector<2x8x1xf32>
    %13 = math.sqrt %12 : vector<2x8x1xf32>
    %14 = arith.mulf %1, %1 : vector<2x8x128xf32>
    %cst_9 = arith.constant dense<0.000000e+00> : vector<2x8xf32>
    %15 = vector.multi_reduction <add>, %14, %cst_9 [2] : vector<2x8x128xf32> to vector<2x8xf32>
    %16 = vector.shape_cast %15 : vector<2x8xf32> to vector<2x8x1xf32>
    %17 = math.sqrt %16 : vector<2x8x1xf32>
    %cst_10 = arith.constant 9.99999996E-13 : f32
    %18 = vector.broadcast %cst_10 : f32 to vector<2x8x1xf32>
    %19 = arith.maximumf %13, %18 : vector<2x8x1xf32>
    %20 = vector.broadcast %19 : vector<2x8x1xf32> to vector<2x8x128xf32>
    %21 = arith.divf %0, %20 : vector<2x8x128xf32>
    %cst_11 = arith.constant 9.99999996E-13 : f32
    %22 = vector.broadcast %cst_11 : f32 to vector<2x8x1xf32>
    %23 = arith.maximumf %17, %22 : vector<2x8x1xf32>
    %24 = vector.broadcast %23 : vector<2x8x1xf32> to vector<2x8x128xf32>
    %25 = arith.divf %1, %24 : vector<2x8x128xf32>
    "tpu.trace_start"() <{level = 10 : i32, message = "nmc,nkc->nmk"}> : () -> ()
    %cst_12 = arith.constant dense<0.000000e+00> : vector<2x8x8xf32>
    %26 = tpu.matmul %21, %25, %cst_12 {dimension_numbers = #tpu.dot_dimension_numbers<[2], [2], [1], [1], [0, 0, 0, 1, 1, 1], [0], [0]>} : vector<2x8x128xf32>, vector<2x8x128xf32>, vector<2x8x8xf32> -> vector<2x8x8xf32>
    "tpu.trace_stop"() : () -> ()
    %27 = tpu.iota {dimensions = array<i32: 1>} : vector<2x8x8xi32>
    %28 = tpu.iota {dimensions = array<i32: 2>} : vector<2x8x8xi32>
    %29 = arith.cmpi ne, %27, %28 : vector<2x8x8xi32>
    %30 = math.absf %26 : vector<2x8x8xf32>
    %cst_13 = arith.constant 0.000000e+00 : f32
    %31 = vector.broadcast %cst_13 : f32 to vector<2x8x8xf32>
    %32 = arith.select %29, %30, %31 : vector<2x8x8xi1>, vector<2x8x8xf32>
    %33 = vector.shape_cast %32 : vector<2x8x8xf32> to vector<1x2x8x8xf32>
    %cst_14 = arith.constant dense<0.000000e+00> : vector<1xf32>
    %34 = vector.multi_reduction <add>, %33, %cst_14 [1, 2, 3] : vector<1x2x8x8xf32> to vector<1xf32>
    %35 = vector.shape_cast %34 : vector<1xf32> to vector<1x1x1x1xf32>
    %36 = vector.extract %35[0, 0, 0, 0] : f32 from vector<1x1x1x1xf32>
    %cst_15 = arith.constant 0.0416666642 : f32
    %37 = arith.mulf %36, %cst_15 : f32
    %c0_16 = arith.constant 0 : index
    %c0_17 = arith.constant 0 : index
    %38 = memref.load %arg3[%c0_16, %c0_17] : memref<1x1xf32, #tpu.memory_space<smem>>
    memref.store %37, %arg3[%c0_16, %c0_17] : memref<1x1xf32, #tpu.memory_space<smem>>
    return
  }
}

</mosaic_0001>

<bundles_post_ra>
// kernel: tpu_custom_call.1
= control target key start
LH: loop header
LB: loop body
LE: loop exit
PB: predicated region body
PF: predicated region fallthrough
CT: control target
= control target key end

     0   :  { %9 = vsyncpa [#allocation3], 0  ;;  %s522_s0 = inlined_call_operand.hbm [shape: f32[2,8,128], index: 0, kind: input, shape index: {}]   ;;  %s523_s1 = inlined_call_operand.hbm [shape: f32[2,8,128], index: 1, kind: input, shape index: {}]   ;;  %s524_s2 = inlined_call_operand.hbm [shape: f32[1,1], index: 2, kind: output, shape index: {0}]   ;;  %s525_s3 = inlined_call_operand.hbm [shape: f32[1,1], index: 3, kind: output, shape index: {1}]  }
   0x1   :  { %10 = vsyncpa [#allocation6], 0 }
   0x2   :  { %11 = vsyncpa [#allocation4], 0 }
   0x3   :  { %12 = vsyncpa [#allocation9], 0  ;;  %s422_s12 = smov [#allocation2]   ;;  %s350_s16 = scalar_lea.hbm %s522_s0, 256 }
   0x4   :  { %s18_s13 = sshll.u32 %s422_s12, 4  ;;  %p351_p0 = scmp.ne.s32.totalorder %s522_s0, %s350_s16  ;;  %s19_s13 = int_to_ptr.vmem [resolvable:$true] %s18_s13 }
   0x5   :  { %p354_p1 = scmp.lt.u32.totalorder %s350_s16, %s522_s0 }
   0x7   :  { %p356_p2 = pnand %p354_p1, %p351_p0 }
   0x9   :  { %359 = shalt.err (!%p356_p2)
}
   0xa   :  { %s360_s21 = scalar_lea.vmem %s19_s13, 256  ;;  %p365_p4 = scmp.lt.s32.totalorder %s19_s13, %s19_s13 }
   0xb   :  { %p361_p3 = scmp.ne.s32.totalorder %s19_s13, %s360_s21  ;;  %p366_p5 = scmp.lt.s32.totalorder %s360_s21, %s360_s21 }
   0xd   :  { %p367_p6 = por %p366_p5, %p365_p4 }
   0xf   :  { %p368_p7 = pnand %p367_p6, %p361_p3 }
  0x11   :  { %371 = shalt.err (!%p368_p7)
}
  0x12   :  { %s423_s22 = smov 128   ;;  %s424_s23 = smov 8  }
  0x13   :  { %24 = dma.hbm_to_vmem [thread:$0]  %s522_s0, 256, %s19_s13, [#allocation3], %s423_s22, %s423_s22, %s424_s23  }
  0x14   :  { %s425_s26 = smov [#allocation5]   ;;  %s372_s30 = scalar_lea.hbm %s523_s1, 256 }
  0x15   :  { %s30_s27 = sshll.u32 %s425_s26, 4  ;;  %p373_p8 = scmp.ne.s32.totalorder %s523_s1, %s372_s30  ;;  %s31_s27 = int_to_ptr.vmem [resolvable:$true] %s30_s27 }
  0x16   :  { %p376_p9 = scmp.lt.u32.totalorder %s372_s30, %s523_s1 }
  0x18   :  { %p378_p10 = pnand %p376_p9, %p373_p8 }
  0x1a   :  { %381 = shalt.err (!%p378_p10)
}
  0x1b   :  { %s382_s8 = scalar_lea.vmem %s31_s27, 256  ;;  %p387_p12 = scmp.lt.s32.totalorder %s31_s27, %s31_s27 }
  0x1c   :  { %p383_p11 = scmp.ne.s32.totalorder %s31_s27, %s382_s8  ;;  %p388_p13 = scmp.lt.s32.totalorder %s382_s8, %s382_s8 }
  0x1e   :  { %p389_p0 = por %p388_p13, %p387_p12 }
  0x20   :  { %p390_p1 = pnand %p389_p0, %p383_p11 }
  0x22   :  { %393 = shalt.err (!%p390_p1)
}
  0x23   :  { %36 = dma.hbm_to_vmem [thread:$0]  %s523_s1, 256, %s31_s27, [#allocation6], %s423_s22, %s423_s22, %s424_s23  }
  0x24   :  { %414 = dma.done.wait [#allocation3], 256  }
  0x25   :  { %415 = vsyncadd [#allocation3], 4294967040 }
  0x26   :  { %416 = dma.done.wait [#allocation6], 256  }
  0x27   :  { %417 = vsyncadd [#allocation6], 4294967040  ;;  %v474_v0 = vld [vmem:[#allocation5] sm:$0xff]  ;;  %v476_v1 = vld [vmem:[#allocation2] sm:$0xff]  ;;  %v426_v8 = vmov 0.0   ;;  %vm427_vm0 = vmmov 0   ;;  %v256_v50 = vlaneseq }
  0x28   :  { %v478_v2 = vld [vmem:[#allocation5 + $0x8] sm:$0xff]  ;;  %v84_v3 = vmul.f32 %v474_v0, %v474_v0  ;;  %v64_v4 = vmul.f32 %v476_v1, %v476_v1  ;;  %v484_v5 = vld [vmem:[#allocation2 + $0x8] sm:$0xff]  ;;  %312 = vmatprep.subr.mxu0 %v426_v8  ;;  %317 = vmatprep.subr.mxu1 %v426_v8  ;;  %v47_v45 = vsub.f32 %v476_v1, %v474_v0  ;;  %vm265_vm10 = vcmask 64512   ;;  %s394_s13 = scalar_lea.hbm %s524_s2, 16 }
  0x29   :  { %v85_v6 = vmul.f32 %v478_v2, %v478_v2  ;;  %v65_v7 = vmul.f32 %v484_v5, %v484_v5  ;;  %314 = vmatprep.mubr.msk.f32.mxu0 %vm427_vm0, %v426_v8  ;;  %319 = vmatprep.mubr.msk.f32.mxu1 %vm427_vm0, %v426_v8  ;;  %v48_v46 = vsub.f32 %v484_v5, %v478_v2  ;;  %v257_v51 = vshrl.u32 %v256_v50, 7  ;;  %p395_p2 = scmp.ne.s32.totalorder %s524_s2, %s394_s13  ;;  %p398_p3 = scmp.lt.u32.totalorder %s394_s13, %s524_s2 }
  0x2a   :  { %86 = vadd.xlane.f32.xlu0 %v84_v3  ;;  %66 = vadd.xlane.f32.xlu1 %v64_v4  ;;  %v49_v47 = vmul.f32 %v47_v45, %v47_v45  ;;  %v259_v52 = vand.u32 127, %v256_v50 }
  0x2b   :  { %v50_v48 = vmul.f32 %v48_v46, %v48_v46  ;;  %p400_p4 = pnand %p398_p3, %p395_p2 }
  0x2c   :  { %vm260_vm9 = vcmp.ne.s32.totalorder %v257_v51, %v259_v52 }
  0x2d   :  { %v51_v49 = vadd.f32 %v50_v48, %v49_v47 }
  0x2e   :  { %88 = vadd.xlane.f32.xlu0 %v85_v6  ;;  %68 = vadd.xlane.f32.xlu1 %v65_v7 }
  0x32   :  { %52 = vadd.xlane.f32.xlu0 %v51_v49 }
  0xb7   :  { %v87_v9 = vpop.xlane.xlu0 %86  ;;  %v67_v10 = vpop.xlane.xlu1 %66 }
  0xb8   :  { %334 = vrsqrt.f32 %v87_v9  ;;  %vm92_vm1 = vcmp.eq.f32.partialorder %v87_v9, inf  ;;  %v95_v16 = vand.u32 2147483648, %v87_v9  ;;  %vm94_vm2 = vcmp.eq.f32.partialorder %v87_v9, 0.0 }
  0xb9   :  { %336 = vrsqrt.f32 %v67_v10  ;;  %vm72_vm3 = vcmp.eq.f32.partialorder %v67_v10, inf  ;;  %v75_v19 = vand.u32 2147483648, %v67_v10  ;;  %vm74_vm4 = vcmp.eq.f32.partialorder %v67_v10, 0.0 }
  0xbb   :  { %v89_v11 = vpop.xlane.xlu0 %88  ;;  %v69_v12 = vpop.xlane.xlu1 %68 }
  0xbc   :  { %338 = vrsqrt.f32 %v89_v11  ;;  %vm99_vm5 = vcmp.eq.f32.partialorder %v89_v11, inf  ;;  %vm101_vm6 = vcmp.eq.f32.partialorder %v89_v11, 0.0  ;;  %v102_v28 = vand.u32 2147483648, %v89_v11 }
  0xbd   :  { %340 = vrsqrt.f32 %v69_v12  ;;  %vm79_vm7 = vcmp.eq.f32.partialorder %v69_v12, inf  ;;  %v82_v31 = vand.u32 2147483648, %v69_v12  ;;  %vm81_vm8 = vcmp.eq.f32.partialorder %v69_v12, 0.0 }
  0xc2   :  { %v335_v13 = vpop.eup %334 }
  0xc3   :  { %v337_v14 = vpop.eup %336  ;;  %v91_v15 = vmul.f32 %v335_v13, %v87_v9 }
  0xc4   :  { %v71_v17 = vmul.f32 %v337_v14, %v67_v10 }
  0xc5   :  { %v93_v18 = vsel %vm92_vm1, %v87_v9, %v91_v15 }
  0xc6   :  { %v339_v20 = vpop.eup %338  ;;  %v73_v21 = vsel %vm72_vm3, %v67_v10, %v71_v17  ;;  %v96_v22 = vsel %vm94_vm2, %v95_v16, %v93_v18 }
  0xc7   :  { %v341_v23 = vpop.eup %340  ;;  %v76_v24 = vsel %vm74_vm4, %v75_v19, %v73_v21  ;;  %v98_v25 = vmul.f32 %v339_v20, %v89_v11  ;;  %v110_v26 = vmax.f32 %v96_v22, 1e-12 }
  0xc8   :  { %v104_v27 = vmax.f32 %v76_v24, 1e-12  ;;  %v78_v29 = vmul.f32 %v341_v23, %v69_v12 }
  0xc9   :  { %v100_v30 = vsel %vm99_vm5, %v89_v11, %v98_v25  ;;  %342 = vrcp.f32 %v110_v26 }
  0xca   :  { %344 = vrcp.f32 %v104_v27  ;;  %v80_v32 = vsel %vm79_vm7, %v69_v12, %v78_v29  ;;  %v103_v33 = vsel %vm101_vm6, %v102_v28, %v100_v30 }
  0xcb   :  { %v83_v34 = vsel %vm81_vm8, %v82_v31, %v80_v32  ;;  %v111_v35 = vmax.f32 %v103_v33, 1e-12 }
  0xcc   :  { %v105_v36 = vmax.f32 %v83_v34, 1e-12 }
  0xcd   :  { %346 = vrcp.f32 %v111_v35 }
  0xce   :  { %348 = vrcp.f32 %v105_v36 }
  0xd3   :  { %v343_v37 = vpop.eup %342 }
  0xd4   :  { %v345_v38 = vpop.eup %344  ;;  %v113_v39 = vmul.f32 %v343_v37, %v474_v0  ;;  %v53_v0 = vpop.xlane.xlu0 %52 }
  0xd5   :  { %v107_v41 = vmul.f32 %v345_v38, %v476_v1  ;;  %v54_v1 = vrot.slane %v53_v0, 4 }
  0xd6   :  { %313 = vmatpush3.xpose.msra.mxu0 %v113_v39 }
  0xd7   :  { %v347_v40 = vpop.eup %346 }
  0xd8   :  { %v349_v42 = vpop.eup %348  ;;  %v115_v43 = vmul.f32 %v347_v40, %v478_v2  ;;  %v55_v2 = vadd.f32 %v54_v1, %v53_v0 }
  0xd9   :  { %315 = vmatmul.mubr.f32.vlgmr.msra.gmra.mrb[0].mxu0 %v107_v41  ;;  %v109_v44 = vmul.f32 %v349_v42, %v484_v5 }
  0xda   :  { %318 = vmatpush3.xpose.msra.mxu1 %v115_v43  ;;  %v56_v3 = vrot.slane %v55_v2, 2 }
  0xdc   :  { %v57_v4 = vadd.f32 %v56_v3, %v55_v2 }
  0xdd   :  { %320 = vmatmul.mubr.f32.vlgmr.msra.gmra.mrb[0].mxu1 %v109_v44 }
  0xde   :  { %v58_v5 = vrot.slane %v57_v4, 1 }
  0xe0   :  { %v59_v6 = vadd.f32 %v58_v5, %v57_v4 }
  0xe2   :  { %322 = vpush %v59_v6 }
 0x113   :  { %s323_s1 = spop %322 }
 0x114   :  { %s61_s10 = smul.f32 0.5, %s323_s1 }
 0x116   :  { %63 = sst [smem:[#allocation7]] %s61_s10 }
 0x1ac   :  { %v182_v53 = vpop.f32.mrb[0].mxu0 }
 0x1ad   :  { %v261_v54 = vand.u32 2147483647, %v182_v53  ;;  %v316_v55 = vpop.f32.mrb[1].mxu0 }
 0x1af   :  { %v263_v57 = vsel %vm260_vm9, %v261_v54, 0.0 }
 0x1b0   :  { %v252_v56 = vpop.f32.mrb[0].mxu1  ;;  %v266_v61 = vsel %vm265_vm10, %v263_v57, 0.0 }
 0x1b1   :  { %v262_v58 = vand.u32 2147483647, %v252_v56  ;;  %v321_v59 = vpop.f32.mrb[1].mxu1 }
 0x1b3   :  { %v264_v60 = vsel %vm260_vm9, %v262_v58, 0.0 }
 0x1b4   :  { %v267_v62 = vsel %vm265_vm10, %v264_v60, 0.0 }
 0x1b5   :  { %v268_v63 = vadd.f32 %v267_v62, %v266_v61 }
 0x1b7   :  { %269 = vadd.xlane.f32.xlu1 %v268_v63 }
 0x1b8   :  { %403 = shalt.err (!%p400_p4)
}
 0x1b9   :  { %s428_s18 = smov [#allocation7]   ;;  %s404_s25 = scalar_lea.hbm %s525_s3, 16 }
 0x1ba   :  { %288 = dma.smem_to_hbm %s428_s18, 16, %s524_s2, [#allocation4]  }
 0x1bb   :  { %p405_p5 = scmp.ne.s32.totalorder %s525_s3, %s404_s25  ;;  %p408_p6 = scmp.lt.u32.totalorder %s404_s25, %s525_s3 }
 0x1bd   :  { %p410_p7 = pnand %p408_p6, %p405_p5 }
 0x244   :  { %v270_v7 = vpop.xlane.xlu1 %269 }
 0x245   :  { %v271_v8 = vrot.slane %v270_v7, 4 }
 0x247   :  { %v272_v9 = vadd.f32 %v271_v8, %v270_v7 }
 0x249   :  { %v273_v10 = vrot.slane %v272_v9, 2 }
 0x24b   :  { %v274_v11 = vadd.f32 %v273_v10, %v272_v9 }
 0x24d   :  { %v275_v12 = vrot.slane %v274_v11, 1 }
 0x24f   :  { %v276_v13 = vadd.f32 %v275_v12, %v274_v11 }
 0x251   :  { %324 = vpush %v276_v13 }
 0x282   :  { %s325_s21 = spop %324 }
 0x283   :  { %s278_s22 = smul.f32 0.041666664, %s325_s21 }
 0x285   :  { %280 = sst [smem:[#allocation8]] %s278_s22 }
 0x286   :  { %413 = shalt.err (!%p410_p7)
}
 0x287   :  { %s429_s29 = smov [#allocation8]  }
 0x288   :  { %296 = dma.smem_to_hbm %s429_s29, 16, %s525_s3, [#allocation9]  }
 0x289   :  { %418 = dma.done.wait [#allocation4], 16  }
 0x28a   :  { %419 = vsyncadd [#allocation4], 4294967280 }
 0x28b   :  { %420 = dma.done.wait [#allocation9], 16  }
 0x28c   :  { %421 = vsyncadd [#allocation9], 4294967280 }
 0x28d   :  { %303 = sfence }
 0x28e   :  { %304 = vsyncpa [#allocation3], 1 }
 0x28f   :  { %305 = vsyncpa [#allocation6], 1 }
 0x290   :  { %306 = vsyncpa [#allocation4], 1 }
 0x291   :  { %307 = vsyncpa [#allocation9], 1 }

</bundles_post_ra>
